<compile_context>
chip_gen: v7x
topology: tpu7x:2x2x1
jax: 0.10.0
libtpu: 0.0.40
codegen_flags: <defaults>
</compile_context>

<pallas_src>
import functools

import jax
import jax.numpy as jnp
from jax.experimental import pallas as pl
from jax.experimental.pallas import tpu as pltpu


def _round_up(n, m):
    return ((n + m - 1) // m) * m


def _choose_batch_tile(batch, requested):
    """Pick a lane-dense batch tile (multiple of 128) that keeps >=2 grid steps
    when the batch is large enough (v7x megacore)."""
    requested = max(128, _round_up(int(requested), 128))
    if batch >= 256:
        half = _round_up((batch + 1) // 2, 128)
        return min(requested, half)
    return 128


def _critic_decoder_kernel(nonlinearity, x_ref, *refs):
    """refs = (wt0, b0, wt1, b1, ..., w_last, b_last, out_ref).

    Hidden-layer weights arrive pre-transposed as [c_out, c_in] and biases as
    [c_out, 1] (transposed-activation layout).  The last layer's weight arrives
    in its natural [C, 1] orientation with bias [1, 1] so the C->1 projection
    runs as a VPU multiply + cross-sublane (XLU) reduce instead of a degenerate
    N=1 MXU matmul.
    """
    out_ref = refs[-1]
    param_refs = refs[:-1]
    n_layers = len(param_refs) // 2

    # Transposed activation layout: channels on sublanes, batch on the
    # 128-wide lane axis.  The transpose is XLU work (free slot in this
    # HBM-bound kernel) and makes every vreg lane-dense despite C == 32.
    h = x_ref[...].astype(jnp.float32).T            # [C, tile]

    for i in range(n_layers - 1):
        wt = param_refs[2 * i][...].astype(jnp.float32)       # [c_out, c_in]
        b = param_refs[2 * i + 1][...].astype(jnp.float32)    # [c_out, 1]
        h = jnp.dot(wt, h, preferred_element_type=jnp.float32) + b
        if nonlinearity == "relu":
            h = jnp.maximum(h, 0.0)
        elif nonlinearity == "gelu":
            h = jax.nn.gelu(h)
        else:
            raise ValueError(f"unsupported nonlinearity {nonlinearity}")

    w_last = param_refs[-2][...].astype(jnp.float32)          # [C, 1]
    b_last = param_refs[-1][...].astype(jnp.float32)          # [1, 1]
    # C -> 1 projection on the VPU/XLU: broadcast multiply + sublane reduce.
    y = jnp.sum(h * w_last, axis=0, keepdims=True) + b_last   # [1, tile]
    out_ref[...] = y.astype(out_ref.dtype)


def critic_decoder_forward(x, params, *, nonlinearity="relu", batch_tile=2048):
    """x: [B, C]; params: list of (W [c_in, c_out], b [c_out]) — torch layout.

    Returns stack(x).reshape(-1), shape [B].
    """
    B, C = x.shape
    n_layers = len(params)
    assert params[-1][0].shape[1] == 1, "CriticDecoder maps channels -> 1"

    tile = _choose_batch_tile(B, batch_tile)
    num_tiles = (B + tile - 1) // tile
    b_pad = num_tiles * tile
    if b_pad != B:
        x = jnp.pad(x, ((0, b_pad - B), (0, 0)))

    # Flatten params into the pallas_call argument list.  Hidden layers are
    # pre-transposed (tiny [C, C] matrices, negligible HBM traffic, DMA'd once
    # thanks to the constant index_map); the last layer stays [C, 1].
    flat_args = []
    in_specs = [pl.BlockSpec((tile, C), lambda i: (i, 0))]   # x tile
    for li, (w, b) in enumerate(params):
        c_in, c_out = w.shape
        if li < n_layers - 1:
            wk = w.T                       # [c_out, c_in]
            bk = b.reshape(c_out, 1)
        else:
            wk = w                         # [c_in, 1]
            bk = b.reshape(1, 1)
        flat_args.append(wk)
        in_specs.append(pl.BlockSpec(wk.shape, lambda i: (0, 0)))
        flat_args.append(bk)
        in_specs.append(pl.BlockSpec(bk.shape, lambda i: (0, 0)))

    kernel = functools.partial(_critic_decoder_kernel, nonlinearity)

    cp_kwargs = dict(dimension_semantics=("parallel",))
    # Double-buffered x tile + f32 transposed activations + params/out slack.
    vmem_bytes = (2 * tile * C * x.dtype.itemsize
                  + 2 * tile * C * 4
                  + (1 << 20))
    if vmem_bytes > (16 << 20):            # only matters for huge tiles (v5e)
        cp_kwargs["vmem_limit_bytes"] = int(min(2 * vmem_bytes, 64 << 20))

    out = pl.pallas_call(
        kernel,
        out_shape=jax.ShapeDtypeStruct((num_tiles, tile), x.dtype),
        grid_spec=pltpu.PrefetchScalarGridSpec(
            num_scalar_prefetch=0,
            grid=(num_tiles,),
            in_specs=in_specs,
            out_specs=pl.BlockSpec((1, tile), lambda i: (i, 0)),
        ),
        compiler_params=pltpu.CompilerParams(**cp_kwargs),
    )(x, *flat_args)

    # Lane-dense (num_tiles, tile) -> flat [B]  (the .view(-1) of the module).
    return out.reshape(-1)[:B]


def init_linear_stack_params(key, n_layers, channels, out_channels):
    """Deterministic init mimicking nn.Linear default (uniform +-1/sqrt(fan_in))."""
    params = []
    c_in = channels
    for i in range(n_layers):
        c_out = channels if i < n_layers - 1 else out_channels
        key, kw, kb = jax.random.split(key, 3)
        bound = 1.0 / (c_in ** 0.5)
        w = jax.random.uniform(kw, (c_in, c_out), jnp.float32, -bound, bound)
        b = jax.random.uniform(kb, (c_out,), jnp.float32, -bound, bound)
        params.append((w, b))
        c_in = c_out
    return params


def critic_decoder_reference(x, params, nonlinearity="relu"):
    h = x
    for i, (w, b) in enumerate(params):
        h = h @ w + b
        if i < len(params) - 1:
            h = jnp.maximum(h, 0.0) if nonlinearity == "relu" else jax.nn.gelu(h)
    return h.reshape(-1)


if __name__ == "__main__":
    # config: decoder_layers=3, channels=32
    decoder_layers = 3
    channels = 32

    key = jax.random.PRNGKey(0)

    # (batch, nonlinearity): single padded tile + multi-tile ragged batch.
    configs = [(16, "relu"), (300, "gelu")]
    for batch, nonlin in configs:
        key, kx, kp = jax.random.split(key, 3)
        x = jax.random.normal(kx, (batch, channels), jnp.float32)
        params = init_linear_stack_params(kp, decoder_layers, channels,
                                          out_channels=1)

        out = critic_decoder_forward(x, params, nonlinearity=nonlin)
        out = jax.block_until_ready(out)

        ref = critic_decoder_reference(x, params, nonlinearity=nonlin)
        assert out.shape == (batch,), (out.shape, batch)
        assert jnp.allclose(out, ref, atol=1e-4, rtol=1e-4), (out, ref)

    print("KERNEL_OK")
</pallas_src>

<mosaic_0001>
module attributes {stable_mosaic.version = 11 : i64} {
  func.func @_critic_decoder_kernel(%arg0: i32, %arg1: memref<128x32xf32, #tpu.memory_space<vmem>>, %arg2: memref<32x32xf32, #tpu.memory_space<vmem>>, %arg3: memref<32x1xf32, #tpu.memory_space<vmem>>, %arg4: memref<32x32xf32, #tpu.memory_space<vmem>>, %arg5: memref<32x1xf32, #tpu.memory_space<vmem>>, %arg6: memref<32x1xf32, #tpu.memory_space<vmem>>, %arg7: memref<1x1xf32, #tpu.memory_space<vmem>>, %arg8: memref<1x128xf32, #tpu.memory_space<vmem>>) attributes {dimension_semantics = [#tpu.dimension_semantics<parallel>], iteration_bounds = array<i64: 1>, scalar_prefetch = 0 : i64, scratch_operands = 0 : i64, tpu.core_type = #tpu.core_type<tc>, window_params = [{transform_indices = @transform_0, window_bounds = array<i64: 128, 32>}, {pipeline_mode = #tpu.pipeline_mode<synchronous>, transform_indices = @transform_1, window_bounds = array<i64: 32, 32>}, {pipeline_mode = #tpu.pipeline_mode<synchronous>, transform_indices = @transform_2, window_bounds = array<i64: 32, 1>}, {pipeline_mode = #tpu.pipeline_mode<synchronous>, transform_indices = @transform_3, window_bounds = array<i64: 32, 32>}, {pipeline_mode = #tpu.pipeline_mode<synchronous>, transform_indices = @transform_4, window_bounds = array<i64: 32, 1>}, {pipeline_mode = #tpu.pipeline_mode<synchronous>, transform_indices = @transform_5, window_bounds = array<i64: 32, 1>}, {pipeline_mode = #tpu.pipeline_mode<synchronous>, transform_indices = @transform_6, window_bounds = array<i64: 1, 1>}, {transform_indices = @transform_7, window_bounds = array<i64: 1, 128>}]} {
    %c0 = arith.constant 0 : index
    %c0_0 = arith.constant 0 : index
    %0 = vector.load %arg1[%c0, %c0_0] : memref<128x32xf32, #tpu.memory_space<vmem>>, vector<128x32xf32>
    %1 = tpu.transpose %0, [1, 0] : vector<128x32xf32> -> vector<32x128xf32>
    %c0_1 = arith.constant 0 : index
    %c0_2 = arith.constant 0 : index
    %2 = vector.load %arg2[%c0_1, %c0_2] : memref<32x32xf32, #tpu.memory_space<vmem>>, vector<32x32xf32>
    %c0_3 = arith.constant 0 : index
    %c0_4 = arith.constant 0 : index
    %3 = vector.load %arg3[%c0_3, %c0_4] : memref<32x1xf32, #tpu.memory_space<vmem>>, vector<32x1xf32>
    %cst = arith.constant dense<0.000000e+00> : vector<32x128xf32>
    %4 = tpu.matmul %2, %1, %cst {dimension_numbers = #tpu.dot_dimension_numbers<[1], [0], [0], [1], [0, 0, 1, 1], [], []>} : vector<32x32xf32>, vector<32x128xf32>, vector<32x128xf32> -> vector<32x128xf32>
    %5 = vector.broadcast %3 : vector<32x1xf32> to vector<32x128xf32>
    %6 = arith.addf %4, %5 : vector<32x128xf32>
    %cst_5 = arith.constant 0.000000e+00 : f32
    %7 = vector.broadcast %cst_5 : f32 to vector<32x128xf32>
    %8 = arith.maximumf %6, %7 : vector<32x128xf32>
    %c0_6 = arith.constant 0 : index
    %c0_7 = arith.constant 0 : index
    %9 = vector.load %arg4[%c0_6, %c0_7] : memref<32x32xf32, #tpu.memory_space<vmem>>, vector<32x32xf32>
    %c0_8 = arith.constant 0 : index
    %c0_9 = arith.constant 0 : index
    %10 = vector.load %arg5[%c0_8, %c0_9] : memref<32x1xf32, #tpu.memory_space<vmem>>, vector<32x1xf32>
    %cst_10 = arith.constant dense<0.000000e+00> : vector<32x128xf32>
    %11 = tpu.matmul %9, %8, %cst_10 {dimension_numbers = #tpu.dot_dimension_numbers<[1], [0], [0], [1], [0, 0, 1, 1], [], []>} : vector<32x32xf32>, vector<32x128xf32>, vector<32x128xf32> -> vector<32x128xf32>
    %12 = vector.broadcast %10 : vector<32x1xf32> to vector<32x128xf32>
    %13 = arith.addf %11, %12 : vector<32x128xf32>
    %cst_11 = arith.constant 0.000000e+00 : f32
    %14 = vector.broadcast %cst_11 : f32 to vector<32x128xf32>
    %15 = arith.maximumf %13, %14 : vector<32x128xf32>
    %c0_12 = arith.constant 0 : index
    %c0_13 = arith.constant 0 : index
    %16 = vector.load %arg6[%c0_12, %c0_13] : memref<32x1xf32, #tpu.memory_space<vmem>>, vector<32x1xf32>
    %c0_14 = arith.constant 0 : index
    %c0_15 = arith.constant 0 : index
    %17 = vector.load %arg7[%c0_14, %c0_15] : memref<1x1xf32, #tpu.memory_space<vmem>>, vector<1x1xf32>
    %18 = vector.broadcast %16 : vector<32x1xf32> to vector<32x128xf32>
    %19 = arith.mulf %15, %18 : vector<32x128xf32>
    %cst_16 = arith.constant dense<0.000000e+00> : vector<128xf32>
    %20 = vector.multi_reduction <add>, %19, %cst_16 [0] : vector<32x128xf32> to vector<128xf32>
    %21 = vector.shape_cast %20 : vector<128xf32> to vector<1x128xf32>
    %22 = vector.broadcast %17 : vector<1x1xf32> to vector<1x128xf32>
    %23 = arith.addf %21, %22 : vector<1x128xf32>
    %c0_17 = arith.constant 0 : index
    %c0_18 = arith.constant 0 : index
    %24 = vector.load %arg8[%c0_17, %c0_18] : memref<1x128xf32, #tpu.memory_space<vmem>>, vector<1x128xf32>
    tpu.vector_store %arg8[%c0_17, %c0_18], %23 {strides = array<i32>} : memref<1x128xf32, #tpu.memory_space<vmem>>, vector<1x128xf32>,
    return
  }
  func.func @transform_0(%arg0: i32) -> (i32, i32) {
    %c0_i32 = arith.constant 0 : i32
    %c0_i32_0 = arith.constant 0 : i32
    return %arg0, %c0_i32 : i32, i32
  }
  func.func @transform_1(%arg0: i32) -> (i32, i32) {
    %c0_i32 = arith.constant 0 : i32
    %c0_i32_0 = arith.constant 0 : i32
    %c0_i32_1 = arith.constant 0 : i32
    return %c0_i32, %c0_i32_0 : i32, i32
  }
  func.func @transform_2(%arg0: i32) -> (i32, i32) {
    %c0_i32 = arith.constant 0 : i32
    %c0_i32_0 = arith.constant 0 : i32
    %c0_i32_1 = arith.constant 0 : i32
    return %c0_i32, %c0_i32_0 : i32, i32
  }
  func.func @transform_3(%arg0: i32) -> (i32, i32) {
    %c0_i32 = arith.constant 0 : i32
    %c0_i32_0 = arith.constant 0 : i32
    %c0_i32_1 = arith.constant 0 : i32
    return %c0_i32, %c0_i32_0 : i32, i32
  }
  func.func @transform_4(%arg0: i32) -> (i32, i32) {
    %c0_i32 = arith.constant 0 : i32
    %c0_i32_0 = arith.constant 0 : i32
    %c0_i32_1 = arith.constant 0 : i32
    return %c0_i32, %c0_i32_0 : i32, i32
  }
  func.func @transform_5(%arg0: i32) -> (i32, i32) {
    %c0_i32 = arith.constant 0 : i32
    %c0_i32_0 = arith.constant 0 : i32
    %c0_i32_1 = arith.constant 0 : i32
    return %c0_i32, %c0_i32_0 : i32, i32
  }
  func.func @transform_6(%arg0: i32) -> (i32, i32) {
    %c0_i32 = arith.constant 0 : i32
    %c0_i32_0 = arith.constant 0 : i32
    %c0_i32_1 = arith.constant 0 : i32
    return %c0_i32, %c0_i32_0 : i32, i32
  }
  func.func @transform_7(%arg0: i32) -> (i32, i32) {
    %c0_i32 = arith.constant 0 : i32
    %c0_i32_0 = arith.constant 0 : i32
    return %arg0, %c0_i32 : i32, i32
  }
}

</mosaic_0001>

<bundles_post_ra>
// kernel: tpu_custom_call.1
= control target key start
LH: loop header
LB: loop body
LE: loop exit
PB: predicated region body
PF: predicated region fallthrough
CT: control target
= control target key end

     0   :  { %s814_s0 = inlined_call_operand.vmem [shape: f32[128,32], index: 0, kind: input, shape index: {}]   ;;  %s815_s1 = inlined_call_operand.vmem [shape: f32[32,32], index: 1, kind: input, shape index: {}]   ;;  %s816_s2 = inlined_call_operand.vmem [shape: f32[32,1], index: 2, kind: input, shape index: {}]   ;;  %s817_s3 = inlined_call_operand.vmem [shape: f32[32,32], index: 3, kind: input, shape index: {}]   ;;  %s818_s4 = inlined_call_operand.vmem [shape: f32[32,1], index: 4, kind: input, shape index: {}]   ;;  %s819_s5 = inlined_call_operand.vmem [shape: f32[32,1], index: 5, kind: input, shape index: {}]   ;;  %s820_s6 = inlined_call_operand.<no memory space> [shape: f32[1,1], index: 6, kind: input, shape index: {}]   ;;  %s821_s7 = inlined_call_operand.hbm [shape: f32[1,128], index: 7, kind: output, shape index: {}]  }
   0x1   :  { %v12_v0 = vstv %s820_s6 }
   0x2   :  { %13 = vst [vmem:[#allocation2] sm:$0x1] %v12_v0 }
   0x3   :  { %v29_v1 = vld [vmem:[%s814_s0] sm:$0xff]  ;;  %v30_v2 = vld [vmem:[%s814_s0 + $0x8] sm:$0xff]  ;;  %vm73_vm0 = vcmask 261120   ;;  %v31_v3 = vld [vmem:[%s814_s0 + $0x10] sm:$0xff]  ;;  %v603_v7 = vmov 0  }
   0x4   :  { %v519_v4 = vpack.c.bf16 %v30_v2, %v29_v1  ;;  %vm659_vm1 = vmpackc.low %vm73_vm0, %vm73_vm0  ;;  %v32_v6 = vld [vmem:[%s814_s0 + $0x18] sm:$0xff]  ;;  %577 = vset.pattern.permute.xlu0 %v603_v7  ;;  %578 = vset.pattern.permute.xlu1 %v603_v7  ;;  %v45_v9 = vld [vmem:[%s815_s1] sm:$0xff] }
   0x5   :  { %v525_v8 = vpack.c.bf16 %v32_v6, %v31_v3  ;;  %v33_v10 = vld [vmem:[%s814_s0 + $0x20] sm:$0xff]  ;;  %v34_v11 = vld [vmem:[%s814_s0 + $0x28] sm:$0xff]  ;;  %499 = vmatprep.mubr.msk.f32.mxu0 %vm73_vm0, %v45_v9  ;;  %v51_v13 = vld [vmem:[%s816_s2 + $0x10] sm:$0xff] }
   0x6   :  { %521 = vmatprep.subr.msk.bf16.mxu0 %vm659_vm1, %v519_v4  ;;  %v49_v12 = vld [vmem:[%s816_s2] sm:$0xff]  ;;  %65 = vperm.xlu1 %578, %v51_v13   ;;  %v531_v14 = vpack.c.bf16 %v34_v11, %v33_v10  ;;  %v50_v15 = vld [vmem:[%s816_s2 + $0x8] sm:$0xff]  ;;  %v52_v16 = vld [vmem:[%s816_s2 + $0x18] sm:$0xff] }
   0x7   :  { %524 = vmatpush3.bf16.xpose.msk.msra.mxu0 %vm659_vm1, %v519_v4  ;;  %55 = vperm.xlu0 %577, %v49_v12  }
   0x8   :  { %527 = vmatprep.subr.msk.bf16.mxu0 %vm659_vm1, %v525_v8 }
   0x9   :  { %14 = vsyncpa [#allocation4], 0  ;;  %v227_v17 = vld [vmem:[%s818_s4] sm:$0xff]  ;;  %v35_v18 = vld [vmem:[%s814_s0 + $0x30] sm:$0xff] }
   0xa   :  { %70 = vperm.xlu1 %578, %v52_v16   ;;  %v36_v19 = vld [vmem:[%s814_s0 + $0x38] sm:$0xff]  ;;  %v228_v20 = vld [vmem:[%s818_s4 + $0x8] sm:$0xff]  ;;  %v229_v22 = vld [vmem:[%s818_s4 + $0x10] sm:$0xff] }
   0xb   :  { %60 = vperm.xlu0 %577, %v50_v15   ;;  %v537_v21 = vpack.c.bf16 %v36_v19, %v35_v18  ;;  %v230_v23 = vld [vmem:[%s818_s4 + $0x18] sm:$0xff]  ;;  %v352_v24 = vld [vmem:[%s819_s5] sm:$0xff]  ;;  %v38_v26 = vld [vmem:[%s814_s0 + $0x48] sm:$0xff] }
   0xc   :  { %v37_v25 = vld [vmem:[%s814_s0 + $0x40] sm:$0xff]  ;;  %v353_v27 = vld [vmem:[%s819_s5 + $0x8] sm:$0xff]  ;;  %v354_v29 = vld [vmem:[%s819_s5 + $0x10] sm:$0xff] }
   0xd   :  { %v543_v28 = vpack.c.bf16 %v38_v26, %v37_v25  ;;  %v355_v30 = vld [vmem:[%s819_s5 + $0x18] sm:$0xff]  ;;  %v356_v31 = vld [vmem:[#allocation2] sm:$0x1]  ;;  %v39_v32 = vld [vmem:[%s814_s0 + $0x50] sm:$0xff] }
   0xe   :  { %238 = vperm.xlu1 %578, %v228_v20   ;;  %v40_v33 = vld [vmem:[%s814_s0 + $0x58] sm:$0xff]  ;;  %v41_v35 = vld [vmem:[%s814_s0 + $0x60] sm:$0xff]  ;;  %v42_v36 = vld [vmem:[%s814_s0 + $0x68] sm:$0xff] }
   0xf   :  { %530 = vmatpush3.bf16.xpose.msk.msra.mxu0 %vm659_vm1, %v525_v8  ;;  %233 = vperm.xlu0 %577, %v227_v17   ;;  %v549_v34 = vpack.c.bf16 %v40_v33, %v39_v32  ;;  %v555_v37 = vpack.c.bf16 %v42_v36, %v41_v35  ;;  %v43_v38 = vld [vmem:[%s814_s0 + $0x70] sm:$0xff]  ;;  %v44_v39 = vld [vmem:[%s814_s0 + $0x78] sm:$0xff]  ;;  %v46_v41 = vld [vmem:[%s815_s1 + $0x8] sm:$0xff] }
  0x10   :  { %533 = vmatprep.subr.msk.bf16.mxu0 %vm659_vm1, %v531_v14  ;;  %v561_v40 = vpack.c.bf16 %v44_v39, %v43_v38  ;;  %v47_v42 = vld [vmem:[%s815_s1 + $0x10] sm:$0xff]  ;;  %v48_v43 = vld [vmem:[%s815_s1 + $0x18] sm:$0xff]  ;;  %v223_v44 = vld [vmem:[%s817_s3] sm:$0xff] }
  0x11   :  { %513 = vmatprep.mubr.msk.f32.mxu1 %vm73_vm0, %v223_v44  ;;  %v224_v63 = vld [vmem:[%s817_s3 + $0x8] sm:$0xff]  ;;  %v225_v0 = vld [vmem:[%s817_s3 + $0x10] sm:$0xff]  ;;  %v226_v1 = vld [vmem:[%s817_s3 + $0x18] sm:$0xff]  ;;  %s604_s3 = smov [#allocation3]  }
  0x12   :  { %248 = vperm.xlu1 %578, %v230_v23   ;;  %s407_s19 = sshll.u32 %s604_s3, 4  ;;  %s408_s19 = int_to_ptr.vmem [resolvable:$true] %s407_s19 }
  0x13   :  { %243 = vperm.xlu0 %577, %v229_v22   ;;  %s579_s20 = scalar_lea.vmem %s408_s19, 16  ;;  %s583_s21 = scalar_lea.vmem %s408_s19, 32 }
  0x14   :  { %p580_p0 = scmp.ne.s32.totalorder %s408_s19, %s579_s20  ;;  %p584_p1 = scmp.lt.s32.totalorder %s408_s19, %s408_s19 }
  0x15   :  { %p585_p2 = scmp.lt.s32.totalorder %s583_s21, %s579_s20 }
  0x16   :  { %364 = vperm.xlu1 %578, %v353_v27  }
  0x17   :  { %536 = vmatpush3.bf16.xpose.msk.msra.mxu0 %vm659_vm1, %v531_v14  ;;  %359 = vperm.xlu0 %577, %v352_v24   ;;  %p586_p3 = por %p585_p2, %p584_p1 }
  0x18   :  { %539 = vmatprep.subr.msk.bf16.mxu0 %vm659_vm1, %v537_v21 }
  0x19   :  { %p587_p4 = pnand %p586_p3, %p580_p0 }
  0x1a   :  { %374 = vperm.xlu1 %578, %v355_v30  }
  0x1b   :  { %369 = vperm.xlu0 %577, %v354_v29  }
  0x1f   :  { %542 = vmatpush3.bf16.xpose.msk.msra.mxu0 %vm659_vm1, %v537_v21  ;;  %392 = vperm.xlu0 %577, %v356_v31  }
  0x20   :  { %545 = vmatprep.subr.msk.bf16.mxu0 %vm659_vm1, %v543_v28 }
  0x27   :  { %548 = vmatpush3.bf16.xpose.msk.msra.mxu0 %vm659_vm1, %v543_v28  ;;  %v395_v28 = vlaneseq }
  0x28   :  { %551 = vmatprep.subr.msk.bf16.mxu0 %vm659_vm1, %v549_v34 }
  0x29   :  { %v396_v31 = vshrl.u32 %v395_v28, 7 }
  0x2f   :  { %554 = vmatpush3.bf16.xpose.msk.msra.mxu0 %vm659_vm1, %v549_v34  ;;  %v397_v34 = vsub.s32 0, %v396_v31 }
  0x30   :  { %557 = vmatprep.subr.msk.bf16.mxu0 %vm659_vm1, %v555_v37 }
  0x37   :  { %560 = vmatpush3.bf16.xpose.msk.msra.mxu0 %vm659_vm1, %v555_v37 }
  0x38   :  { %563 = vmatprep.subr.msk.bf16.mxu0 %vm659_vm1, %v561_v40 }
  0x3f   :  { %566 = vmatpush3.bf16.xpose.msk.msra.mxu0 %vm659_vm1, %v561_v40 }
  0x46   :  { %500 = vmatmul.mubr.msk.f32.vlgmr.msra.gmra.mrb[0].mxu0 %vm73_vm0, %v46_v41 }
  0x47   :  { %502 = vmatprep.mubr.msk.f32.mxu0 %vm73_vm0, %v47_v42 }
  0x4a   :  { %503 = vmatmul.mubr.msk.f32.gmra.mrb[2].mxu0 %vm73_vm0, %v48_v43 }
  0x85   :  { %v66_v46 = vpop.permute.xlu1 %65 }
  0x86   :  { %v56_v45 = vpop.permute.xlu0 %55 }
  0x89   :  { %v71_v53 = vpop.permute.xlu1 %70 }
  0x8a   :  { %v61_v47 = vpop.permute.xlu0 %60 }
  0x8d   :  { %v239_v3 = vpop.permute.xlu1 %238 }
  0x8e   :  { %v234_v2 = vpop.permute.xlu0 %233 }
  0x91   :  { %v249_v5 = vpop.permute.xlu1 %248 }
  0x92   :  { %v244_v4 = vpop.permute.xlu0 %243 }
  0x95   :  { %v365_v12 = vpop.permute.xlu1 %364 }
  0x96   :  { %v360_v10 = vpop.permute.xlu0 %359 }
  0x99   :  { %v375_v25 = vpop.permute.xlu1 %374 }
  0x9a   :  { %v370_v23 = vpop.permute.xlu0 %369 }
  0x9e   :  { %v393_v36 = vpop.permute.xlu0 %392 }
  0x9f   :  { %v398_v38 = vrot.slane %v393_v36, %v397_v34 }
 0x119   :  { %v501_v48 = vpop.f32.mrb[0].mxu0 }
 0x11a   :  { %v206_v49 = vadd.f32 %v501_v48, %v61_v47  ;;  %v200_v50 = vpop.f32.mrb[1].mxu0 }
 0x11b   :  { %v201_v51 = vadd.f32 %v200_v50, %v56_v45 }
 0x11c   :  { %v220_v52 = vmax.f32 %v206_v49, 0.0 }
 0x11d   :  { %v219_v54 = vmax.f32 %v201_v51, 0.0  ;;  %v504_v55 = vpop.f32.mrb[2].mxu0 }
 0x11e   :  { %v216_v56 = vadd.f32 %v504_v55, %v71_v53  ;;  %v210_v57 = vpop.f32.mrb[3].mxu0 }
 0x11f   :  { %v211_v58 = vadd.f32 %v210_v57, %v66_v46  ;;  %v567_v59 = vpack.c.bf16 %v220_v52, %v219_v54 }
 0x120   :  { %v222_v60 = vmax.f32 %v216_v56, 0.0 }
 0x121   :  { %v221_v61 = vmax.f32 %v211_v58, 0.0  ;;  %568 = vmatprep.subr.bf16.mxu1 %v567_v59 }
 0x122   :  { %570 = vmatpush3.bf16.msra.mxu1 %v567_v59 }
 0x123   :  { %v571_v62 = vpack.c.bf16 %v222_v60, %v221_v61 }
 0x125   :  { %572 = vmatprep.subr.bf16.mxu1 %v571_v62 }
 0x126   :  { %574 = vmatpush3.bf16.msra.mxu1 %v571_v62 }
 0x129   :  { %514 = vmatmul.mubr.msk.f32.vlgmr.msra.gmra.mrb[0].mxu1 %vm73_vm0, %v224_v63 }
 0x12a   :  { %516 = vmatprep.mubr.msk.f32.mxu1 %vm73_vm0, %v225_v0 }
 0x12d   :  { %517 = vmatmul.mubr.msk.f32.gmra.mrb[2].mxu1 %vm73_vm0, %v226_v1 }
 0x1fc   :  { %v515_v6 = vpop.f32.mrb[0].mxu1 }
 0x1fd   :  { %v335_v7 = vadd.f32 %v515_v6, %v239_v3  ;;  %v329_v8 = vpop.f32.mrb[1].mxu1 }
 0x1fe   :  { %v330_v9 = vadd.f32 %v329_v8, %v234_v2 }
 0x1ff   :  { %v349_v11 = vmax.f32 %v335_v7, 0.0 }
 0x200   :  { %v348_v13 = vmax.f32 %v330_v9, 0.0  ;;  %v518_v14 = vpop.f32.mrb[2].mxu1 }
 0x201   :  { %v378_v15 = vmul.f32 %v365_v12, %v349_v11  ;;  %v345_v16 = vadd.f32 %v518_v14, %v249_v5  ;;  %v339_v17 = vpop.f32.mrb[3].mxu1 }
 0x202   :  { %v377_v18 = vmul.f32 %v360_v10, %v348_v13  ;;  %v340_v19 = vadd.f32 %v339_v17, %v244_v4 }
 0x203   :  { %v351_v21 = vmax.f32 %v345_v16, 0.0 }
 0x204   :  { %v381_v20 = vadd.f32 %v378_v15, %v377_v18  ;;  %v350_v22 = vmax.f32 %v340_v19, 0.0 }
 0x205   :  { %v380_v26 = vmul.f32 %v375_v25, %v351_v21 }
 0x206   :  { %v379_v24 = vmul.f32 %v370_v23, %v350_v22 }
 0x208   :  { %v382_v27 = vadd.f32 %v381_v20, %v379_v24 }
 0x20a   :  { %v383_v29 = vadd.f32 %v382_v27, %v380_v26 }
 0x20c   :  { %v384_v30 = vrot.slane %v383_v29, 4 }
 0x20e   :  { %v385_v32 = vadd.f32 %v384_v30, %v383_v29 }
 0x210   :  { %v386_v33 = vrot.slane %v385_v32, 2 }
 0x212   :  { %v387_v35 = vadd.f32 %v386_v33, %v385_v32 }
 0x214   :  { %v388_v37 = vrot.slane %v387_v35, 1 }
 0x216   :  { %v389_v39 = vadd.f32 %v388_v37, %v387_v35 }
 0x218   :  { %v399_v40 = vadd.f32 %v398_v38, %v389_v39 }
 0x21a   :  { %400 = vst [vmem:[#allocation3] sm:$0x1] %v399_v40 }
 0x21b   :  { %590 = shalt.err (!%p587_p4)
}
 0x21c   :  { %s591_s24 = scalar_lea.hbm %s821_s7, 16 }
 0x21d   :  { %p592_p5 = scmp.ne.s32.totalorder %s821_s7, %s591_s24  ;;  %p595_p6 = scmp.lt.u32.totalorder %s591_s24, %s821_s7 }
 0x21f   :  { %p597_p7 = pnand %p595_p6, %p592_p5 }
 0x221   :  { %600 = shalt.err (!%p597_p7)
}
 0x222   :  { %410 = dma.vmem_to_hbm [thread:$0]  %s408_s19, 16, %s821_s7, [#allocation4]  }
 0x223   :  { %601 = dma.done.wait [#allocation4], 16  }
 0x224   :  { %602 = vsyncadd [#allocation4], 4294967280 }
 0x225   :  { %414 = vsyncpa [#allocation4], 1 }

</bundles_post_ra>
